<compile_context>
chip_gen: v7x
topology: tpu7x:2x2x1
jax: 0.10.0
libtpu: 0.0.40
codegen_flags: <defaults>
</compile_context>

<pallas_src>
import math
import functools

import jax
import jax.numpy as jnp
from jax.experimental import pallas as pl
from jax.experimental.pallas import tpu as pltpu


# ------------------------------- helpers --------------------------------------

def _rmsnorm(x, w, eps=1e-6):
    # x: (T, D) f32, w: (1, D) f32
    var = jnp.mean(x * x, axis=-1, keepdims=True)
    return w * (x * jax.lax.rsqrt(var + eps))


def _const_spec(shape):
    """Grid-invariant block: single-buffer it if the installed Pallas supports pipeline_mode."""
    idx = lambda *_: (0,) * len(shape)
    try:
        return pl.BlockSpec(shape, idx, pipeline_mode=pl.Buffered(1))
    except (TypeError, AttributeError):
        return pl.BlockSpec(shape, idx)


def _vmem_limit_bytes():
    # ~85% of physical VMEM: ≈108 MiB on v5e/v6e (128 MiB), ≈54 MiB on v7x (64 MiB per TC).
    try:
        cap = int(pltpu.get_tpu_info().vmem_capacity_bytes)
    except Exception:
        cap = 64 * 1024 * 1024
    return int(cap * 0.85)


# ----------------------- pass 1: RMSNorm + QKV projection ----------------------

def qkv_proj_kernel(x_ref, n1w_ref, wq_ref, wk_ref, wv_ref, bq_ref, bk_ref, bv_ref,
                    q_ref, k_ref, v_ref, *, num_heads, head_dim, compute_dtype):
    x = x_ref[0].astype(jnp.float32)                              # (T, D)
    xn = _rmsnorm(x, n1w_ref[...]).astype(compute_dtype)
    T = x.shape[0]

    def proj(w_ref, b_ref):
        y = jnp.dot(xn, w_ref[...], preferred_element_type=jnp.float32) + b_ref[...]
        return jnp.transpose(y.reshape(T, num_heads, head_dim), (1, 0, 2))   # (H, T, hd)

    q_ref[0] = (proj(wq_ref, bq_ref) * (1.0 / math.sqrt(head_dim))).astype(q_ref.dtype)
    k_ref[0] = proj(wk_ref, bk_ref).astype(k_ref.dtype)
    v_ref[0] = proj(wv_ref, bv_ref).astype(v_ref.dtype)


# ------------- pass 2: flash attention + out-projection + residual 1 -----------

def flash_attn_kernel(q_ref, k_ref, v_ref, xres_ref, wo_ref, bo_ref, o_ref,
                      m_sc, l_sc, acc_sc, *, compute_dtype, exact_recip):
    ki = pl.program_id(2)
    nk = pl.num_programs(2)

    @pl.when(ki == 0)
    def _():
        m_sc[...] = jnp.full(m_sc.shape, -jnp.inf, jnp.float32)
        l_sc[...] = jnp.zeros(l_sc.shape, jnp.float32)
        acc_sc[...] = jnp.zeros(acc_sc.shape, jnp.float32)

    q = q_ref[0]                                                  # (H, TQ, hd), pre-scaled
    k = k_ref[0]                                                  # (H, TK, hd)
    v = v_ref[0]                                                  # (H, TK, hd)

    s = jnp.einsum('hqd,hkd->hqk', q, k, preferred_element_type=jnp.float32)  # (H, TQ, TK)
    m_prev = m_sc[...]                                            # (H, TQ, 1)
    m_new = jnp.maximum(m_prev, jnp.max(s, axis=-1, keepdims=True))
    alpha = jnp.exp(m_prev - m_new)
    p = jnp.exp(s - m_new)                                        # (H, TQ, TK) f32
    l_sc[...] = alpha * l_sc[...] + jnp.sum(p, axis=-1, keepdims=True)
    acc_sc[...] = alpha * acc_sc[...] + jnp.einsum(
        'hqk,hkd->hqd', p.astype(compute_dtype), v, preferred_element_type=jnp.float32)
    m_sc[...] = m_new

    @pl.when(ki == nk - 1)
    def _():
        l = l_sc[...]
        inv_l = (1.0 / l) if exact_recip else pl.reciprocal(l, approx=True)   # EUP on bf16 path
        attn = acc_sc[...] * inv_l                                # (H, TQ, hd) f32
        H, TQ, hd = acc_sc.shape
        attn = jnp.transpose(attn, (1, 0, 2)).reshape(TQ, H * hd)  # one lane-dense relayout
        o = jnp.dot(attn.astype(compute_dtype), wo_ref[...],
                    preferred_element_type=jnp.float32) + bo_ref[...]
        o_ref[0] = (xres_ref[0].astype(jnp.float32) + o).astype(o_ref.dtype)  # dropout = id


# ------------- pass 3: RMSNorm2 + SwiGLU FFN (streamed I) + residual 2 ---------

def ffn_kernel(y_ref, n2w_ref, w1_ref, b1_ref, w3_ref, b3_ref, w2_ref, b2_ref,
               o_ref, xn_sc, acc_sc, *, compute_dtype):
    ci = pl.program_id(2)
    nc = pl.num_programs(2)

    @pl.when(ci == 0)
    def _():
        y = y_ref[0].astype(jnp.float32)                          # (T, D)
        xn_sc[...] = _rmsnorm(y, n2w_ref[...]).astype(compute_dtype)
        acc_sc[...] = y + b2_ref[...]                             # residual + final bias (once)

    xn = xn_sc[...]
    h1 = jnp.dot(xn, w1_ref[...], preferred_element_type=jnp.float32) + b1_ref[...]
    h1 = h1 * jax.nn.sigmoid(h1)                                  # SiLU in f32 (EUP)
    h3 = jnp.dot(xn, w3_ref[...], preferred_element_type=jnp.float32) + b3_ref[...]
    acc_sc[...] += jnp.dot((h1 * h3).astype(compute_dtype), w2_ref[...],
                           preferred_element_type=jnp.float32)

    @pl.when(ci == nc - 1)
    def _():
        o_ref[0] = acc_sc[...].astype(o_ref.dtype)                # dropout = id


# ------------------------------- wrapper --------------------------------------

def transformer_block(x, params, *, num_heads, compute_dtype=jnp.float32,
                      q_tile=256, kv_tile=256, ffn_chunk=512):
    # q_tile/kv_tile guidance: ~512/256 on v5e/v6e (128 MiB VMEM), 256/128 on v7x (64 MiB).
    B, S, D = x.shape
    I = params["w1"].shape[1]
    head_dim = D // num_heads
    assert D == num_heads * head_dim
    H, hd = num_heads, head_dim

    TQ = min(q_tile, S)
    TK = min(kv_tile, S)
    assert S % TQ == 0 and S % TK == 0, "seq len must be divisible by the tile sizes"
    nQ, nK = S // TQ, S // TK

    CI = min(ffn_chunk, I)
    # BlockSpec (8,128) rule: a chunked lane dim must be a multiple of 128 (or the full I).
    if I % CI != 0 or (CI < I and CI % 128 != 0):
        CI = I   # TODO(synk): pad I instead of falling back to a single FFN chunk
    nC = I // CI

    cdt = jnp.dtype(compute_dtype)
    exact_recip = (cdt == jnp.dtype(jnp.float32))
    f32 = jnp.float32

    # Cast only MXU weight operands to the compute dtype; biases / norm weights stay f32.
    wq = params["wq"].astype(cdt); wk = params["wk"].astype(cdt); wv = params["wv"].astype(cdt)
    wo = params["wo"].astype(cdt)
    w1 = params["w1"].astype(cdt); w3 = params["w3"].astype(cdt); w2 = params["w2"].astype(cdt)
    # TODO(synk): fp8 weight quantization for the FFN / out-proj on v7x.

    vmem_limit = _vmem_limit_bytes()
    isz = lambda n, dt: int(n) * jnp.dtype(dt).itemsize

    # ---- pass 1: fused RMSNorm + Q/K/V projection, written once in (B, H, S, hd) layout ----
    qkv_shape = jax.ShapeDtypeStruct((B, H, S, hd), cdt)
    proj_cost = pl.CostEstimate(
        flops=int(2 * B * S * D * 3 * D),
        transcendentals=int(B * S),
        bytes_accessed=int(isz(B * S * D, x.dtype) + 3 * isz(D * D, cdt)
                           + 3 * isz(B * S * D, cdt)),
    )
    q, k, v = pl.pallas_call(
        functools.partial(qkv_proj_kernel, num_heads=H, head_dim=hd, compute_dtype=cdt),
        out_shape=(qkv_shape, qkv_shape, qkv_shape),
        grid_spec=pltpu.PrefetchScalarGridSpec(
            num_scalar_prefetch=0,
            grid=(B, S // TK),
            in_specs=[
                pl.BlockSpec((1, TK, D), lambda b, t: (b, t, 0)),
                _const_spec((1, D)),
                _const_spec((D, D)), _const_spec((D, D)), _const_spec((D, D)),
                _const_spec((1, D)), _const_spec((1, D)), _const_spec((1, D)),
            ],
            out_specs=(
                pl.BlockSpec((1, H, TK, hd), lambda b, t: (b, 0, t, 0)),
                pl.BlockSpec((1, H, TK, hd), lambda b, t: (b, 0, t, 0)),
                pl.BlockSpec((1, H, TK, hd), lambda b, t: (b, 0, t, 0)),
            ),
        ),
        compiler_params=pltpu.CompilerParams(
            dimension_semantics=("parallel", "parallel"),
            vmem_limit_bytes=vmem_limit,
        ),
        cost_estimate=proj_cost,
    )(x, params["n1w"], wq, wk, wv, params["bq"], params["bk"], params["bv"])

    # ---- pass 2: flash attention over kv tiles + out-projection + residual 1 ----
    attn_cost = pl.CostEstimate(
        flops=int(4 * B * H * S * S * hd + 2 * B * S * D * D),
        transcendentals=int(B * H * S * S),
        bytes_accessed=int(isz(B * S * D, cdt) * (1 + 2 * nQ)      # Q once, K/V re-streamed per q tile
                           + 2 * isz(B * S * D, x.dtype) + isz(D * D, cdt)),
    )
    y1 = pl.pallas_call(
        functools.partial(flash_attn_kernel, compute_dtype=cdt, exact_recip=exact_recip),
        out_shape=jax.ShapeDtypeStruct((B, S, D), x.dtype),
        grid_spec=pltpu.PrefetchScalarGridSpec(
            num_scalar_prefetch=0,
            grid=(B, nQ, nK),
            in_specs=[
                pl.BlockSpec((1, H, TQ, hd), lambda b, qi, ki: (b, 0, qi, 0)),
                # TODO(synk): sweep pipeline_mode=pl.Buffered(3) on K/V if xprof shows exposed DMA.
                pl.BlockSpec((1, H, TK, hd), lambda b, qi, ki: (b, 0, ki, 0)),
                pl.BlockSpec((1, H, TK, hd), lambda b, qi, ki: (b, 0, ki, 0)),
                pl.BlockSpec((1, TQ, D), lambda b, qi, ki: (b, qi, 0)),
                _const_spec((D, D)),
                _const_spec((1, D)),
            ],
            out_specs=pl.BlockSpec((1, TQ, D), lambda b, qi, ki: (b, qi, 0)),
            scratch_shapes=[
                pltpu.VMEM((H, TQ, 1), f32),      # running max (lane-collapsed keepdims layout)
                pltpu.VMEM((H, TQ, 1), f32),      # running denom
                pltpu.VMEM((H, TQ, hd), f32),     # output accumulator
            ],
        ),
        compiler_params=pltpu.CompilerParams(
            dimension_semantics=("parallel", "parallel", "arbitrary"),
            vmem_limit_bytes=vmem_limit,
        ),
        cost_estimate=attn_cost,
    )(q, k, v, x, wo, params["bo"])

    # ---- pass 3: RMSNorm2 + SwiGLU FFN with the intermediate dim as a streamed grid axis ----
    ffn_cost = pl.CostEstimate(
        flops=int(6 * B * S * D * I),
        transcendentals=int(B * S * I),
        bytes_accessed=int(2 * isz(B * S * D, x.dtype) + 3 * isz(D * I, cdt)),
    )
    out = pl.pallas_call(
        functools.partial(ffn_kernel, compute_dtype=cdt),
        out_shape=jax.ShapeDtypeStruct((B, S, D), x.dtype),
        grid_spec=pltpu.PrefetchScalarGridSpec(
            num_scalar_prefetch=0,
            grid=(B, S // TQ, nC),
            in_specs=[
                pl.BlockSpec((1, TQ, D), lambda b, t, c: (b, t, 0)),
                _const_spec((1, D)),
                pl.BlockSpec((D, CI), lambda b, t, c: (0, c)),     # W1 chunk
                pl.BlockSpec((1, CI), lambda b, t, c: (0, c)),     # b1 chunk
                pl.BlockSpec((D, CI), lambda b, t, c: (0, c)),     # W3 chunk
                pl.BlockSpec((1, CI), lambda b, t, c: (0, c)),     # b3 chunk
                pl.BlockSpec((CI, D), lambda b, t, c: (c, 0)),     # W2 chunk
                _const_spec((1, D)),                               # b2
            ],
            out_specs=pl.BlockSpec((1, TQ, D), lambda b, t, c: (b, t, 0)),
            scratch_shapes=[
                pltpu.VMEM((TQ, D), cdt),         # rmsnorm(y1), reused across all I chunks
                pltpu.VMEM((TQ, D), f32),         # f32 FFN + residual accumulator
            ],
        ),
        compiler_params=pltpu.CompilerParams(
            dimension_semantics=("parallel", "parallel", "arbitrary"),
            vmem_limit_bytes=vmem_limit,
        ),
        cost_estimate=ffn_cost,
    )(y1, params["n2w"], w1, params["b1"], w3, params["b3"], w2, params["b2"])

    return out


# --------------------------- pure-JAX reference --------------------------------

def transformer_block_ref(x, params, *, num_heads):
    B, S, D = x.shape
    hd = D // num_heads

    def rmsnorm(v, w):
        var = jnp.mean(v * v, axis=-1, keepdims=True)
        return w * (v * jax.lax.rsqrt(var + 1e-6))

    xn = rmsnorm(x, params["n1w"])
    q = xn @ params["wq"] + params["bq"]
    k = xn @ params["wk"] + params["bk"]
    v = xn @ params["wv"] + params["bv"]
    q = q.reshape(B, S, num_heads, hd).transpose(0, 2, 1, 3)
    k = k.reshape(B, S, num_heads, hd).transpose(0, 2, 1, 3)
    v = v.reshape(B, S, num_heads, hd).transpose(0, 2, 1, 3)
    s = jnp.einsum("bhqd,bhkd->bhqk", q, k) / math.sqrt(hd)
    p = jax.nn.softmax(s, axis=-1)
    o = jnp.einsum("bhqk,bhkd->bhqd", p, v).transpose(0, 2, 1, 3).reshape(B, S, D)
    o = o @ params["wo"] + params["bo"]
    x = x + o
    xn2 = rmsnorm(x, params["n2w"])
    h1 = xn2 @ params["w1"] + params["b1"]
    h1 = h1 * jax.nn.sigmoid(h1)
    h3 = xn2 @ params["w3"] + params["b3"]
    ff = (h1 * h3) @ params["w2"] + params["b2"]
    return x + ff


# ----------------------------------- main --------------------------------------

if __name__ == "__main__":
    # Small config consistent with CustomConfig semantics; I=256 so the FFN I-chunk grid
    # axis (CI=128, the lane-tiling minimum) is exercised with two chunks.
    B, S = 2, 16
    D = 32            # hidden_dim
    I = 256           # intermediate_size
    H = 4             # num_attention_heads (head_dim = 8)

    key = jax.random.PRNGKey(0)
    keys = jax.random.split(key, 16)

    def w(k, shape, scale=0.05):
        return (scale * jax.random.normal(k, shape)).astype(jnp.float32)

    params = {
        "n1w": jnp.ones((1, D), jnp.float32),
        "n2w": jnp.ones((1, D), jnp.float32),
        # attention in_proj / out_proj (pre-transposed to (in, out))
        "wq": w(keys[0], (D, D)), "wk": w(keys[1], (D, D)), "wv": w(keys[2], (D, D)),
        "bq": w(keys[3], (1, D)), "bk": w(keys[4], (1, D)), "bv": w(keys[5], (1, D)),
        "wo": w(keys[6], (D, D)), "bo": w(keys[7], (1, D)),
        # FFN
        "w1": w(keys[8], (D, I)), "b1": w(keys[9], (1, I)),
        "w3": w(keys[10], (D, I)), "b3": w(keys[11], (1, I)),
        "w2": w(keys[12], (I, D)), "b2": w(keys[13], (1, D)),
    }

    x = jax.random.normal(keys[14], (B, S, D), dtype=jnp.float32)
    ref = jax.block_until_ready(transformer_block_ref(x, params, num_heads=H))

    # f32 path: small tiles so the (B, nQ, nK) flash grid and the FFN I-chunk axis are exercised.
    out_f32 = jax.block_until_ready(
        transformer_block(x, params, num_heads=H, compute_dtype=jnp.float32,
                          q_tile=8, kv_tile=8, ffn_chunk=128))
    assert out_f32.shape == (B, S, D)
    assert jnp.allclose(out_f32, ref, atol=2e-3, rtol=2e-3), "f32 mismatch vs reference"

    # bf16 MXU-operand path (v6e/v7x): elementwise math stays f32, so only a looser tolerance.
    out_bf16 = jax.block_until_ready(
        transformer_block(x, params, num_heads=H, compute_dtype=jnp.bfloat16,
                          q_tile=8, kv_tile=8, ffn_chunk=128))
    assert jnp.allclose(out_bf16, ref, atol=3e-2, rtol=3e-2), "bf16 mismatch vs reference"

    print("KERNEL_OK")
</pallas_src>

<mosaic_0001>
module attributes {stable_mosaic.version = 11 : i64} {
  func.func @qkv_proj_kernel(%arg0: i32, %arg1: i32, %arg2: memref<1x8x32xf32, #tpu.memory_space<vmem>>, %arg3: memref<1x32xf32, #tpu.memory_space<vmem>>, %arg4: memref<32x32xf32, #tpu.memory_space<vmem>>, %arg5: memref<32x32xf32, #tpu.memory_space<vmem>>, %arg6: memref<32x32xf32, #tpu.memory_space<vmem>>, %arg7: memref<1x32xf32, #tpu.memory_space<vmem>>, %arg8: memref<1x32xf32, #tpu.memory_space<vmem>>, %arg9: memref<1x32xf32, #tpu.memory_space<vmem>>, %arg10: memref<1x4x8x8xf32, #tpu.memory_space<vmem>>, %arg11: memref<1x4x8x8xf32, #tpu.memory_space<vmem>>, %arg12: memref<1x4x8x8xf32, #tpu.memory_space<vmem>>) attributes {dimension_semantics = [#tpu.dimension_semantics<parallel>, #tpu.dimension_semantics<parallel>], iteration_bounds = array<i64: 2, 2>, scalar_prefetch = 0 : i64, scratch_operands = 0 : i64, tpu.core_type = #tpu.core_type<tc>, window_params = [{transform_indices = @transform_0, window_bounds = array<i64: 1, 8, 32>}, {pipeline_mode = #tpu.pipeline_mode<synchronous>, transform_indices = @transform_1, window_bounds = array<i64: 1, 32>}, {pipeline_mode = #tpu.pipeline_mode<synchronous>, transform_indices = @transform_2, window_bounds = array<i64: 32, 32>}, {pipeline_mode = #tpu.pipeline_mode<synchronous>, transform_indices = @transform_3, window_bounds = array<i64: 32, 32>}, {pipeline_mode = #tpu.pipeline_mode<synchronous>, transform_indices = @transform_4, window_bounds = array<i64: 32, 32>}, {pipeline_mode = #tpu.pipeline_mode<synchronous>, transform_indices = @transform_5, window_bounds = array<i64: 1, 32>}, {pipeline_mode = #tpu.pipeline_mode<synchronous>, transform_indices = @transform_6, window_bounds = array<i64: 1, 32>}, {pipeline_mode = #tpu.pipeline_mode<synchronous>, transform_indices = @transform_7, window_bounds = array<i64: 1, 32>}, {transform_indices = @transform_8, window_bounds = array<i64: 1, 4, 8, 8>}, {transform_indices = @transform_9, window_bounds = array<i64: 1, 4, 8, 8>}, {transform_indices = @transform_10, window_bounds = array<i64: 1, 4, 8, 8>}]} {
    %c0 = arith.constant 0 : index
    %c0_0 = arith.constant 0 : index
    %c0_1 = arith.constant 0 : index
    %0 = vector.load %arg2[%c0, %c0_0, %c0_1] : memref<1x8x32xf32, #tpu.memory_space<vmem>>, vector<1x8x32xf32>
    %1 = vector.shape_cast %0 : vector<1x8x32xf32> to vector<8x32xf32>
    %c0_2 = arith.constant 0 : index
    %c0_3 = arith.constant 0 : index
    %2 = vector.load %arg3[%c0_2, %c0_3] : memref<1x32xf32, #tpu.memory_space<vmem>>, vector<1x32xf32>
    %3 = arith.mulf %1, %1 : vector<8x32xf32>
    %cst = arith.constant dense<0.000000e+00> : vector<8xf32>
    %4 = vector.multi_reduction <add>, %3, %cst [1] : vector<8x32xf32> to vector<8xf32>
    %5 = vector.shape_cast %4 : vector<8xf32> to vector<8x1xf32>
    %cst_4 = arith.constant 3.200000e+01 : f32
    %6 = vector.broadcast %cst_4 : f32 to vector<8x1xf32>
    %7 = arith.divf %5, %6 : vector<8x1xf32>
    %cst_5 = arith.constant 9.99999997E-7 : f32
    %8 = vector.broadcast %cst_5 : f32 to vector<8x1xf32>
    %9 = arith.addf %7, %8 : vector<8x1xf32>
    %10 = math.rsqrt %9 : vector<8x1xf32>
    %11 = vector.broadcast %10 : vector<8x1xf32> to vector<8x32xf32>
    %12 = arith.mulf %1, %11 : vector<8x32xf32>
    %13 = vector.broadcast %2 : vector<1x32xf32> to vector<8x32xf32>
    %14 = arith.mulf %13, %12 : vector<8x32xf32>
    %c0_6 = arith.constant 0 : index
    %c0_7 = arith.constant 0 : index
    %15 = vector.load %arg4[%c0_6, %c0_7] : memref<32x32xf32, #tpu.memory_space<vmem>>, vector<32x32xf32>
    %cst_8 = arith.constant dense<0.000000e+00> : vector<8x32xf32>
    %16 = tpu.matmul %14, %15, %cst_8 {dimension_numbers = #tpu.dot_dimension_numbers<[1], [0], [0], [1], [0, 0, 1, 1], [], []>} : vector<8x32xf32>, vector<32x32xf32>, vector<8x32xf32> -> vector<8x32xf32>
    %c0_9 = arith.constant 0 : index
    %c0_10 = arith.constant 0 : index
    %17 = vector.load %arg7[%c0_9, %c0_10] : memref<1x32xf32, #tpu.memory_space<vmem>>, vector<1x32xf32>
    %18 = vector.broadcast %17 : vector<1x32xf32> to vector<8x32xf32>
    %19 = arith.addf %16, %18 : vector<8x32xf32>
    %20 = vector.shape_cast %19 : vector<8x32xf32> to vector<8x4x8xf32>
    %21 = tpu.transpose %20, [1, 0, 2] : vector<8x4x8xf32> -> vector<4x8x8xf32>
    %cst_11 = arith.constant 0.353553385 : f32
    %22 = vector.broadcast %cst_11 : f32 to vector<4x8x8xf32>
    %23 = arith.mulf %21, %22 : vector<4x8x8xf32>
    %c0_12 = arith.constant 0 : index
    %c0_13 = arith.constant 0 : index
    %c0_14 = arith.constant 0 : index
    %c0_15 = arith.constant 0 : index
    %24 = vector.load %arg10[%c0_12, %c0_13, %c0_14, %c0_15] : memref<1x4x8x8xf32, #tpu.memory_space<vmem>>, vector<1x4x8x8xf32>
    %25 = vector.shape_cast %24 : vector<1x4x8x8xf32> to vector<4x8x8xf32>
    %26 = vector.shape_cast %23 : vector<4x8x8xf32> to vector<1x4x8x8xf32>
    tpu.vector_store %arg10[%c0_12, %c0_13, %c0_14, %c0_15], %26 {strides = array<i32>} : memref<1x4x8x8xf32, #tpu.memory_space<vmem>>, vector<1x4x8x8xf32>,
    %c0_16 = arith.constant 0 : index
    %c0_17 = arith.constant 0 : index
    %27 = vector.load %arg5[%c0_16, %c0_17] : memref<32x32xf32, #tpu.memory_space<vmem>>, vector<32x32xf32>
    %cst_18 = arith.constant dense<0.000000e+00> : vector<8x32xf32>
    %28 = tpu.matmul %14, %27, %cst_18 {dimension_numbers = #tpu.dot_dimension_numbers<[1], [0], [0], [1], [0, 0, 1, 1], [], []>} : vector<8x32xf32>, vector<32x32xf32>, vector<8x32xf32> -> vector<8x32xf32>
    %c0_19 = arith.constant 0 : index
    %c0_20 = arith.constant 0 : index
    %29 = vector.load %arg8[%c0_19, %c0_20] : memref<1x32xf32, #tpu.memory_space<vmem>>, vector<1x32xf32>
    %30 = vector.broadcast %29 : vector<1x32xf32> to vector<8x32xf32>
    %31 = arith.addf %28, %30 : vector<8x32xf32>
    %32 = vector.shape_cast %31 : vector<8x32xf32> to vector<8x4x8xf32>
    %33 = tpu.transpose %32, [1, 0, 2] : vector<8x4x8xf32> -> vector<4x8x8xf32>
    %c0_21 = arith.constant 0 : index
    %c0_22 = arith.constant 0 : index
    %c0_23 = arith.constant 0 : index
    %c0_24 = arith.constant 0 : index
    %34 = vector.load %arg11[%c0_21, %c0_22, %c0_23, %c0_24] : memref<1x4x8x8xf32, #tpu.memory_space<vmem>>, vector<1x4x8x8xf32>
    %35 = vector.shape_cast %34 : vector<1x4x8x8xf32> to vector<4x8x8xf32>
    %36 = vector.shape_cast %33 : vector<4x8x8xf32> to vector<1x4x8x8xf32>
    tpu.vector_store %arg11[%c0_21, %c0_22, %c0_23, %c0_24], %36 {strides = array<i32>} : memref<1x4x8x8xf32, #tpu.memory_space<vmem>>, vector<1x4x8x8xf32>,
    %c0_25 = arith.constant 0 : index
    %c0_26 = arith.constant 0 : index
    %37 = vector.load %arg6[%c0_25, %c0_26] : memref<32x32xf32, #tpu.memory_space<vmem>>, vector<32x32xf32>
    %cst_27 = arith.constant dense<0.000000e+00> : vector<8x32xf32>
    %38 = tpu.matmul %14, %37, %cst_27 {dimension_numbers = #tpu.dot_dimension_numbers<[1], [0], [0], [1], [0, 0, 1, 1], [], []>} : vector<8x32xf32>, vector<32x32xf32>, vector<8x32xf32> -> vector<8x32xf32>
    %c0_28 = arith.constant 0 : index
    %c0_29 = arith.constant 0 : index
    %39 = vector.load %arg9[%c0_28, %c0_29] : memref<1x32xf32, #tpu.memory_space<vmem>>, vector<1x32xf32>
    %40 = vector.broadcast %39 : vector<1x32xf32> to vector<8x32xf32>
    %41 = arith.addf %38, %40 : vector<8x32xf32>
    %42 = vector.shape_cast %41 : vector<8x32xf32> to vector<8x4x8xf32>
    %43 = tpu.transpose %42, [1, 0, 2] : vector<8x4x8xf32> -> vector<4x8x8xf32>
    %c0_30 = arith.constant 0 : index
    %c0_31 = arith.constant 0 : index
    %c0_32 = arith.constant 0 : index
    %c0_33 = arith.constant 0 : index
    %44 = vector.load %arg12[%c0_30, %c0_31, %c0_32, %c0_33] : memref<1x4x8x8xf32, #tpu.memory_space<vmem>>, vector<1x4x8x8xf32>
    %45 = vector.shape_cast %44 : vector<1x4x8x8xf32> to vector<4x8x8xf32>
    %46 = vector.shape_cast %43 : vector<4x8x8xf32> to vector<1x4x8x8xf32>
    tpu.vector_store %arg12[%c0_30, %c0_31, %c0_32, %c0_33], %46 {strides = array<i32>} : memref<1x4x8x8xf32, #tpu.memory_space<vmem>>, vector<1x4x8x8xf32>,
    return
  }
  func.func @transform_0(%arg0: i32, %arg1: i32) -> (i32, i32, i32) {
    %c0_i32 = arith.constant 0 : i32
    %c0_i32_0 = arith.constant 0 : i32
    return %arg0, %arg1, %c0_i32 : i32, i32, i32
  }
  func.func @transform_1(%arg0: i32, %arg1: i32) -> (i32, i32) {
    %c0_i32 = arith.constant 0 : i32
    %c0_i32_0 = arith.constant 0 : i32
    %c0_i32_1 = arith.constant 0 : i32
    return %c0_i32, %c0_i32_0 : i32, i32
  }
  func.func @transform_2(%arg0: i32, %arg1: i32) -> (i32, i32) {
    %c0_i32 = arith.constant 0 : i32
    %c0_i32_0 = arith.constant 0 : i32
    %c0_i32_1 = arith.constant 0 : i32
    return %c0_i32, %c0_i32_0 : i32, i32
  }
  func.func @transform_3(%arg0: i32, %arg1: i32) -> (i32, i32) {
    %c0_i32 = arith.constant 0 : i32
    %c0_i32_0 = arith.constant 0 : i32
    %c0_i32_1 = arith.constant 0 : i32
    return %c0_i32, %c0_i32_0 : i32, i32
  }
  func.func @transform_4(%arg0: i32, %arg1: i32) -> (i32, i32) {
    %c0_i32 = arith.constant 0 : i32
    %c0_i32_0 = arith.constant 0 : i32
    %c0_i32_1 = arith.constant 0 : i32
    return %c0_i32, %c0_i32_0 : i32, i32
  }
  func.func @transform_5(%arg0: i32, %arg1: i32) -> (i32, i32) {
    %c0_i32 = arith.constant 0 : i32
    %c0_i32_0 = arith.constant 0 : i32
    %c0_i32_1 = arith.constant 0 : i32
    return %c0_i32, %c0_i32_0 : i32, i32
  }
  func.func @transform_6(%arg0: i32, %arg1: i32) -> (i32, i32) {
    %c0_i32 = arith.constant 0 : i32
    %c0_i32_0 = arith.constant 0 : i32
    %c0_i32_1 = arith.constant 0 : i32
    return %c0_i32, %c0_i32_0 : i32, i32
  }
  func.func @transform_7(%arg0: i32, %arg1: i32) -> (i32, i32) {
    %c0_i32 = arith.constant 0 : i32
    %c0_i32_0 = arith.constant 0 : i32
    %c0_i32_1 = arith.constant 0 : i32
    return %c0_i32, %c0_i32_0 : i32, i32
  }
  func.func @transform_8(%arg0: i32, %arg1: i32) -> (i32, i32, i32, i32) {
    %c0_i32 = arith.constant 0 : i32
    %c0_i32_0 = arith.constant 0 : i32
    %c0_i32_1 = arith.constant 0 : i32
    return %arg0, %c0_i32, %arg1, %c0_i32_0 : i32, i32, i32, i32
  }
  func.func @transform_9(%arg0: i32, %arg1: i32) -> (i32, i32, i32, i32) {
    %c0_i32 = arith.constant 0 : i32
    %c0_i32_0 = arith.constant 0 : i32
    %c0_i32_1 = arith.constant 0 : i32
    return %arg0, %c0_i32, %arg1, %c0_i32_0 : i32, i32, i32, i32
  }
  func.func @transform_10(%arg0: i32, %arg1: i32) -> (i32, i32, i32, i32) {
    %c0_i32 = arith.constant 0 : i32
    %c0_i32_0 = arith.constant 0 : i32
    %c0_i32_1 = arith.constant 0 : i32
    return %arg0, %c0_i32, %arg1, %c0_i32_0 : i32, i32, i32, i32
  }
}

</mosaic_0001>

<bundles_post_ra>
// kernel: tpu_custom_call.1
= control target key start
LH: loop header
LB: loop body
LE: loop exit
PB: predicated region body
PF: predicated region fallthrough
CT: control target
= control target key end

     0   :  { %s2393_s0 = inlined_call_operand.hbm [shape: f32[2,16,32], index: 0, kind: input, shape index: {}]   ;;  %s2394_s1 = inlined_call_operand.vmem [shape: f32[1,32], index: 1, kind: input, shape index: {}]   ;;  %s2395_s2 = inlined_call_operand.hbm [shape: f32[32,32], index: 2, kind: input, shape index: {}]   ;;  %s2396_s3 = inlined_call_operand.hbm [shape: f32[32,32], index: 3, kind: input, shape index: {}]   ;;  %s2397_s4 = inlined_call_operand.hbm [shape: f32[32,32], index: 4, kind: input, shape index: {}]   ;;  %s2398_s5 = inlined_call_operand.vmem [shape: f32[1,32], index: 5, kind: input, shape index: {}]   ;;  %s2399_s6 = inlined_call_operand.vmem [shape: f32[1,32], index: 6, kind: input, shape index: {}]   ;;  %s2400_s7 = inlined_call_operand.vmem [shape: f32[1,32], index: 7, kind: input, shape index: {}]   ;;  %s2401_s8 = inlined_call_operand.vmem [shape: f32[2,4,16,8], index: 8, kind: output, shape index: {0}]   ;;  %s2402_s9 = inlined_call_operand.vmem [shape: f32[2,4,16,8], index: 9, kind: output, shape index: {1}]   ;;  %s2403_s10 = inlined_call_operand.vmem [shape: f32[2,4,16,8], index: 10, kind: output, shape index: {2}]  }
   0x1   :  { %2410 = sst [smem:[#allocation18_spill]] %s2395_s2 }
   0x2   :  { %2411 = sst [smem:[#allocation19_spill]] %s2396_s3 }
   0x3   :  { %2412 = sst [smem:[#allocation20_spill]] %s2397_s4 }
   0x4   :  { %2413 = sst [smem:[#allocation21_spill]] %s2401_s8 }
   0x5   :  { %2414 = sst [smem:[#allocation22_spill]] %s2402_s9 }
   0x6   :  { %2415 = sst [smem:[#allocation23_spill]] %s2403_s10 }
   0x7   :  { %16 = vsyncpa [#allocation3], 0 }
   0x8   :  { %18 = vsyncpa [#allocation3 + $0x1], 0 }
   0x9   :  { %19 = vsyncpa [#allocation5], 0 }
   0xa   :  { %20 = vsyncpa [#allocation8], 0  ;;  %s1982_s13 = smov 0   ;;  %s1984_s14 = smov 0  }
   0xb   :  { %s1986_s15 = smov 0   ;;  %s1988_s16 = smov 0  }
   0xc   :  { %s1990_s17 = smov 0   ;;  %s1992_s18 = smov 0  }
   0xd   :  { %s1994_s19 = smov 0   ;;  %s1996_s20 = smov 0  }
   0xe LB: > { %2416 = sst [smem:[#allocation15_spill]] %s1895_s16  ;;  %s2404_s21 = sadd.s32 4294967295, %s1911_s20   ;;  %s1911_s20 = sphi %s1996_s20, %s26_s20   ;;  %s1907_s19 = sphi %s1994_s19, %s2450_s19   ;;  %s1903_s18 = sphi %s1992_s18, %s2449_s18   ;;  %s1899_s17 = sphi %s1990_s17, %s2448_s17   ;;  %s1895_s16 = sphi %s1988_s16, %s2447_s16   ;;  %s1891_s15 = sphi %s1986_s15, %s2446_s15   ;;  %s1887_s14 = sphi %s1984_s14, %s2445_s14   ;;  %s1883_s13 = sphi %s1982_s13, %s2444_s13  }
   0xf   : > { %2417 = sst [smem:[#allocation16_spill]] %s1899_s17  ;;  %p60_p0 = scmp.ne.s32.totalorder %s1887_s14, %s1883_s13 }
  0x10   : > { %p2024_p1 = scmp.eq.s32.totalorder %s2404_s21, 0  ;;  %p1503_p2 = scmp.ge.s32.totalorder %s1911_s20, 1 }
  0x11   : > { %p302_p3 = scmp.lt.s32.totalorder %s1911_s20, 5  ;;  %s1913_s25 = smov [#allocation4]  }
  0x12   : > { %s2418_s22 = scalar_select %p2024_p1, 1, 0 }
  0x13   : > { %p2032_p4 = por %p2024_p1, %p60_p0  ;;  %p2036_p5 = pnand %p1503_p2, %p302_p3 }
  0x14   : > { %s317_s26 = sshll.u32 %s1913_s25, 4  ;;  %s1914_s28 = smov [#allocation6]   ;;  %s318_s26 = int_to_ptr.vmem [resolvable:$true] %s317_s26 }
  0x15   : > { %s2419_s23 = scalar_select %p2032_p4, 1, 0 }
  0x16   : > { %s2420_s24 = scalar_select %p2036_p5, 1, 0 }
  0x17   : > { %p1623_p6 = pneg %p2036_p5  ;;  %s330_s29 = sshll.u32 %s1914_s28, 4  ;;  %s2048_s29 = int_to_ptr.vmem [resolvable:$true] %s330_s29 }
  0x18   : > { %s2422_s2 = sld [smem:[#allocation18_spill]] }
  0x19   : > { %p2044_p7 = pnand %p1623_p6, %p2024_p1 }
  0x1b   : > { %p2058_p9 = pneg %p2044_p7 }
  0x1e   : > { %s1723_s12 = scalar_lea.hbm %s2422_s2, 512 }
  0x1f   : > { %p1724_p8 = scmp.ne.s32.totalorder %s2422_s2, %s1723_s12  ;;  %p1730_p12 = scmp.lt.u32.totalorder %s1723_s12, %s2422_s2 }
  0x21   : > { %p1726_p10 = pnand %p2058_p9, %p1724_p8 }
  0x23   : > { %p1727_p11 = pneg %p1726_p10 }
  0x25   : > { %p1732_p13 = pnand %p1730_p12, %p1727_p11 }
  0x27   : > { %1735 = shalt.err (!%p1732_p13)
}
  0x28   : > { %s1736_s30 = scalar_lea.vmem %s318_s26, 512  ;;  %p1744_p6 = scmp.lt.s32.totalorder %s318_s26, %s318_s26 }
  0x29   : > { %p1737_p0 = scmp.ne.s32.totalorder %s318_s26, %s1736_s30  ;;  %p1745_p1 = scmp.lt.s32.totalorder %s1736_s30, %s1736_s30 }
  0x2b   : > { %p1739_p2 = pnand %p1737_p0, %p2058_p9  ;;  %p1746_p4 = por %p1745_p1, %p1744_p6 }
  0x2d   : > { %p1740_p3 = pneg %p1739_p2 }
  0x2f   : > { %p1747_p5 = pnand %p1746_p4, %p1740_p3 }
  0x31   : > { %1750 = shalt.err (!%p1747_p5)
}
  0x32   : > { %s1915_s21 = smov 128   ;;  %s1916_s11 = smov 8  }
  0x33   : > { %1626 = dma.hbm_to_vmem [thread:$0]  (!%p2044_p7), %s2422_s2, 512, %s318_s26, [#allocation5], %s1915_s21, %s1915_s21, %s1916_s11  }
  0x34   : > { %s2424_s3 = sld [smem:[#allocation19_spill]] }
  0x3a   : > { %s1751_s9 = scalar_lea.hbm %s2424_s3, 512 }
  0x3b   : > { %p1752_p1 = scmp.ne.s32.totalorder %s2424_s3, %s1751_s9  ;;  %p1758_p8 = scmp.lt.u32.totalorder %s1751_s9, %s2424_s3 }
  0x3d   : > { %p1754_p4 = pnand %p1752_p1, %p2058_p9 }
  0x3f   : > { %p1755_p5 = pneg %p1754_p4 }
  0x41   : > { %p1760_p10 = pnand %p1758_p8, %p1755_p5 }
  0x43   : > { %1763 = shalt.err (!%p1760_p10)
}
  0x44   : > { %s1764_s26 = scalar_lea.vmem %s2048_s29, 512  ;;  %p1772_p0 = scmp.lt.s32.totalorder %s2048_s29, %s2048_s29 }
  0x45   : > { %p1765_p11 = scmp.ne.s32.totalorder %s2048_s29, %s1764_s26  ;;  %p1773_p2 = scmp.lt.s32.totalorder %s1764_s26, %s1764_s26 }
  0x47   : > { %p1767_p12 = pnand %p1765_p11, %p2058_p9  ;;  %p1774_p3 = por %p1773_p2, %p1772_p0 }
  0x49   : > { %p1768_p13 = pneg %p1767_p12 }
  0x4b   : > { %p1775_p6 = pnand %p1774_p3, %p1768_p13 }
  0x4d   : > { %1778 = shalt.err (!%p1775_p6)
}
  0x4e   : > { %1629 = dma.hbm_to_vmem [thread:$0]  (!%p2044_p7), %s2424_s3, 512, %s2048_s29, [#allocation5], %s1915_s21, %s1915_s21, %s1916_s11  }
  0x4f   : > { %s1917_s16 = smov [#allocation7]   ;;  %s2425_s4 = sld [smem:[#allocation20_spill]] }
  0x50   : > { %s343_s17 = sshll.u32 %s1917_s16, 4  ;;  %s344_s17 = int_to_ptr.vmem [resolvable:$true] %s343_s17 }
  0x55   : > { %s1779_s13 = scalar_lea.hbm %s2425_s4, 512 }
  0x56   : > { %p1780_p1 = scmp.ne.s32.totalorder %s2425_s4, %s1779_s13  ;;  %p1786_p8 = scmp.lt.u32.totalorder %s1779_s13, %s2425_s4 }
  0x58   : > { %p1782_p4 = pnand %p1780_p1, %p2058_p9 }
  0x5a   : > { %p1783_p5 = pneg %p1782_p4 }
  0x5c   : > { %p1788_p10 = pnand %p1786_p8, %p1783_p5 }
  0x5e   : > { %1791 = shalt.err (!%p1788_p10)
}
  0x5f   : > { %s1792_s29 = scalar_lea.vmem %s344_s17, 512  ;;  %p1800_p0 = scmp.lt.s32.totalorder %s344_s17, %s344_s17 }
  0x60   : > { %p1793_p11 = scmp.ne.s32.totalorder %s344_s17, %s1792_s29  ;;  %p1801_p2 = scmp.lt.s32.totalorder %s1792_s29, %s1792_s29 }
  0x62   : > { %p1795_p12 = pnand %p1793_p11, %p2058_p9  ;;  %p1802_p3 = por %p1801_p2, %p1800_p0 }
  0x64   : > { %p1796_p13 = pneg %p1795_p12 }
  0x66   : > { %p1803_p6 = pnand %p1802_p3, %p1796_p13 }
  0x68   : > { %1806 = shalt.err (!%p1803_p6)
}
  0x69   : > { %1632 = dma.hbm_to_vmem [thread:$0]  (!%p2044_p7), %s2425_s4, 512, %s344_s17, [#allocation8], %s1915_s21, %s1915_s21, %s1916_s11  }
  0x6a   : > { %s2426_s25 = sadd.s32 4294967295, %s1911_s20   ;;  %s35_s27 = sadd.s32 1, %s1903_s18 }
  0x6b   : > { %p233_p9 = scmp.eq.s32.totalorder %s2426_s25, 3  ;;  %p36_p1 = scmp.ge.s32.totalorder %s35_s27, 2 }
  0x6c   : > { %s38_s9 = sadd.s32 1, %s1907_s19  ;;  %p54_p4 = scmp.ne.s32.totalorder %s1891_s15, %s1887_s14 }
  0x6d   : > { %p55_p5 = scmp.eq.s32.totalorder %s1911_s20, 0  ;;  %s2452_s27 = smov (%p36_p1, %s35_s27), 0 }
  0x6e   : > { %2427 = sst [smem:[#allocation17_spill]] %s2452_s27  ;;  %s2454_s9 = smov (!%p36_p1, %s38_s9), %s1907_s19 }
  0x6f   : > { %s43_s16 = ssub.s32 %s1903_s18, %s2452_s27  ;;  %s47_s10 = sadd.s32 1, %s1891_s15 }
  0x70   : > { %p40_p8 = scmp.ge.s32.totalorder %s2454_s9, 2  ;;  %p2137_p7 = por %p233_p9, %p54_p4 }
  0x71   : > { %p2141_p10 = por %p55_p5, %p54_p4  ;;  %s366_s17 = sand.u32 1, %s1891_s15  }
  0x72   : > { %s2456_s9 = smov (%p40_p8, %s2454_s9), 0  ;;  %p1640_p11 = scmp.lt.s32.totalorder %s1911_s20, 4 }
  0x73   : > { %s1508_s12 = sshll.u32 %s366_s17, 3  ;;  %s42_s13 = ssub.s32 %s1907_s19, %s2456_s9 }
  0x74   : > { %s44_s28 = sor.u32 %s43_s16, %s42_s13  ;;  %s1509_s30 = sshll.u32 %s1907_s19, 1 }
  0x75   : > { %p45_p12 = scmp.eq.s32.totalorder %s44_s28, 0  ;;  %s375_s26 = sadd.s32 %s1903_s18, %s1509_s30 }
  0x76   : > { %s1510_s29 = sshll.u32 %s375_s26, 7  ;;  %s370_s2 = scalar_lea.vmem [#allocation2], %s1508_s12 }
  0x77   : > { %s379_s8 = sshll.u32 %s370_s2, 4  ;;  %s2159_s27 = scalar_lea.hbm %s2393_s0, %s1510_s29  ;;  %s2161_s8 = int_to_ptr.vmem [resolvable:$true] %s379_s8 }
  0x78   : > { %s2154_s25 = scalar_select %p45_p12, %s1891_s15, %s47_s10  }
  0x79   : > { %p2167_p13 = pnand %p1640_p11, %p2141_p10  ;;  %s367_s10 = scalar_lea.sflag [#allocation3], %s366_s17 }
  0x7a   : > { %s1807_s12 = scalar_lea.hbm %s2159_s27, 128  ;;  %s1812_s11 = scalar_lea.hbm %s2393_s0, 512 }
  0x7b   : > { %p1808_p0 = scmp.ne.s32.totalorder %s2159_s27, %s1807_s12  ;;  %p1809_p2 = pneg %p2167_p13 }
  0x7c   : > { %p1813_p9 = scmp.lt.u32.totalorder %s2159_s27, %s2393_s0  ;;  %p1814_p1 = scmp.lt.u32.totalorder %s1812_s11, %s1807_s12 }
  0x7d   : > { %p1810_p3 = pnand %p1809_p2, %p1808_p0  ;;  %p1816_p5 = scmp.lt.u32.totalorder %s1807_s12, %s2159_s27 }
  0x7e   : > { %p1815_p4 = por %p1814_p1, %p1813_p9 }
  0x7f   : > { %p1811_p6 = pneg %p1810_p3 }
  0x80   : > { %p1817_p8 = por %p1816_p5, %p1815_p4 }
  0x82   : > { %p1818_p10 = pnand %p1817_p8, %p1811_p6 }
  0x84   : > { %1821 = shalt.err (!%p1818_p10)
}
  0x85   : > { %s1822_s17 = scalar_lea.vmem %s2161_s8, 128  ;;  %s1918_s30 = smov [#allocation2]  }
  0x86   : > { %p1823_p11 = scmp.ne.s32.totalorder %s2161_s8, %s1822_s17  ;;  %s1827_s26 = sshll.u32 %s1918_s30, 4  ;;  %s1828_s26 = int_to_ptr.vmem [resolvable:$false] %s1827_s26 }
  0x87   : > { %s1829_s29 = scalar_lea.vmem %s1828_s26, 256  ;;  %p1830_p3 = scmp.lt.s32.totalorder %s2161_s8, %s1828_s26 }
  0x88   : > { %p1825_p12 = pnand %p1823_p11, %p1809_p2  ;;  %p1831_p9 = scmp.lt.s32.totalorder %s1829_s29, %s1822_s17 }
  0x8a   : > { %p1826_p0 = pneg %p1825_p12  ;;  %p1832_p1 = por %p1831_p9, %p1830_p3 }
  0x8c   : > { %p1833_p4 = pnand %p1832_p1, %p1826_p0 }
  0x8e   : > { %1836 = shalt.err (!%p1833_p4)
}
  0x8f   : > { %1636 = dma.hbm_to_vmem [thread:$0]  (!%p2167_p13), %s2159_s27, 128, %s2161_s8, %s367_s10  }
  0x90   : > { %p2431_p6 = scmp.ne.s32.totalorder %s2420_s24, 0 }
  0x91   : > { %s2199_s2 = sand.u32 (!%p2431_p6), 1, %s1887_s14   ;;  %p2432_p2 = scmp.ne.s32.totalorder (!%p2431_p6), %s2419_s23, 0 }
  0x92   : > { %388 = sbr.rel (%p2431_p6) target bundleno = 722 (0x2d2), region = 52  ;;  %s1512_s12 = sshll.u32 (!%p2431_p6), %s2199_s2, 3 }
  0x93   : > { %s391_s3 = scalar_lea.sflag (!%p2431_p6), [#allocation3], %s2199_s2  ;;  %s394_s4 = scalar_lea.vmem (!%p2431_p6), [#allocation2], %s1512_s12 }
  0x99   : > { %1870 = dma.done.wait (%p2432_p2), %s391_s3, 128  }
  0x9a   : > { %1872 = vsyncadd (%p2432_p2), %s391_s3, 4294967168  ;;  %p2433_p5 = scmp.ne.s32.totalorder %s2418_s22, 0 }
  0x9c   : > { %1874 = dma.done.wait (%p2433_p5), [#allocation5], 1024  }
  0x9d   : > { %1876 = vsyncadd (%p2433_p5), [#allocation5], 4294966272 }
  0x9e   : > { %1878 = dma.done.wait (%p2433_p5), [#allocation8], 512  }
  0x9f   : > { %1880 = vsyncadd (%p2433_p5), [#allocation8], 4294966784  ;;  %v450_v0 = vld [vmem:[%s394_s4] sm:$0xff]  ;;  %vm453_vm0 = vcmask 261120   ;;  %v469_v3 = vld [vmem:[#allocation4] sm:$0xff]  ;;  %v1919_v6 = vmov 0.0|0.0   ;;  %v568_v44 = vlaneseq }
  0xa0   : > { %v452_v1 = vmul.f32 %v450_v0, %v450_v0  ;;  %v470_v4 = vld [vmem:[#allocation4 + $0x8] sm:$0xff]  ;;  %v708_v5 = vld [vmem:[#allocation6] sm:$0xff]  ;;  %1591 = vmatprep.subr.bf16.mxu0 %v1919_v6  ;;  %1597 = vmatprep.subr.bf16.mxu1 %v1919_v6  ;;  %v471_v9 = vld [vmem:[#allocation4 + $0x10] sm:$0xff]  ;;  %vm1920_vm1 = vmmov 0   ;;  %v1921_v14 = vmov 0.0   ;;  %s1922_s8 = smov 112  }
  0xa1   : > { %v1592_v7 = vpack.c.bf16 %v470_v4, %v469_v3  ;;  %v709_v8 = vld [vmem:[#allocation6 + $0x8] sm:$0xff]  ;;  %v472_v10 = vld [vmem:[#allocation4 + $0x18] sm:$0xff]  ;;  %v710_v12 = vld [vmem:[#allocation6 + $0x10] sm:$0xff]  ;;  %1566 = vmatprep.mubr.msk.f32.mxu0 %vm1920_vm1, %v1921_v14  ;;  %1577 = vmatprep.mubr.msk.f32.mxu1 %vm1920_vm1, %v1921_v14  ;;  %s1923_s16 = smov 120   ;;  %s1924_s17 = smov 104   ;;  %v569_v48 = vshrl.u32 %v568_v44, 7 }
  0xa2   : > { %v454_v2 = vsel %vm453_vm0, %v452_v1, 0.0  ;;  %v1598_v11 = vpack.c.bf16 %v709_v8, %v708_v5  ;;  %v711_v13 = vld [vmem:[#allocation6 + $0x18] sm:$0xff]  ;;  %v1595_v15 = vpack.c.bf16 %v472_v10, %v471_v9  ;;  %v939_v20 = vld [vmem:[#allocation7] sm:$0xff]  ;;  %v940_v21 = vld [vmem:[#allocation7 + $0x8] sm:$0xff]  ;;  %v1925_v42 = vmov 1983009808  }
  0xa3   : > { %455 = vadd.xlane.f32.xlu0 %v454_v2  ;;  %1593 = vmatpush3.bf16.msra.mxu0 %v1592_v7  ;;  %v1601_v16 = vpack.c.bf16 %v711_v13, %v710_v12  ;;  %v1519_v23 = vld [vmem:[%s2394_s1] ss:$0 sm:$0xff]  ;;  %v1604_v25 = vpack.c.bf16 %v940_v21, %v939_v20  ;;  %v942_v28 = vld [vmem:[#allocation7 + $0x18] sm:$0xff]  ;;  %v566_v43 = vunpack.c.l.s4 %v1925_v42  ;;  %v1926_v45 = vmov 1934713408   ;;  %s2263_s30 = sshll.u32 %s2199_s2, 5 }
  0xa4   : > { %1599 = vmatpush3.bf16.msra.mxu1 %v1598_v11  ;;  %1594 = vmatprep.subr.bf16.mxu0 %v1919_v6  ;;  %v941_v27 = vld [vmem:[#allocation7 + $0x10] sm:$0xff]  ;;  %v598_v46 = vunpack.c.l.s4 %v1926_v45  ;;  %vm703_vm2 = vcmask 64512   ;;  %s2277_s26 = scalar_lea.vmem [#allocation9], %s2263_s30  ;;  %s2311_s29 = scalar_lea.vmem [#allocation10], %s2263_s30 }
  0xa5   : > { %1600 = vmatprep.subr.bf16.mxu1 %v1919_v6  ;;  %v1607_v29 = vpack.c.bf16 %v942_v28, %v941_v27  ;;  %v1520_v30 = vld [vmem:[%s2398_s5] ss:$0 sm:$0xff]  ;;  %v567_v47 = vunpack.c.0.s8 %v566_v43  ;;  %s2326_s2 = scalar_lea.vmem [#allocation11], %s2263_s30  ;;  %s2434_s12 = sld [smem:[#allocation16_spill]] (%p2137_p7) }
  0xa6   : > { %v1524_v36 = vld [vmem:[%s2399_s6] ss:$0 sm:$0xff]  ;;  %v599_v50 = vunpack.c.0.s8 %v598_v46  ;;  %s2435_s3 = sld [smem:[#allocation15_spill]] (%p2137_p7) }
  0xa7   : > { %1596 = vmatpush3.bf16.msra.mxu0 %v1595_v15  ;;  %v1528_v37 = vld [vmem:[%s2400_s7] ss:$0 sm:$0xff]  ;;  %v2244_v51 = vsub.s32 %v567_v47, %v569_v48 }
  0xa8   : > { %1602 = vmatpush3.bf16.msra.mxu1 %v1601_v16  ;;  %1603 = vmatprep.subr.bf16.mxu0 %v1919_v6  ;;  %v2246_v58 = vsub.s32 %v599_v50, %v569_v48 }
  0xab   : > { %s1535_s4 = sshll.u32 (%p2137_p7), %s2434_s12, 3 }
  0xac   : > { %s1186_s22 = sadd.s32 (%p2137_p7), %s2435_s3, %s1535_s4 }
  0xad   : > { %s1536_s23 = sshll.u32 (%p2137_p7), %s1186_s22, 3 }
 0x130   : > { %v456_v17 = vpop.xlane.xlu0 %455 }
 0x131   : > { %v458_v18 = vmul.f32 0.03125, %v456_v17 }
 0x133   : > { %v459_v19 = vadd.f32 1e-06, %v458_v18 }
 0x135   : > { %1721 = vrsqrt.f32 %v459_v19 }
 0x13f   : > { %v1722_v22 = vpop.eup %1721 }
 0x140   : > { %v461_v24 = vmul.f32 %v1722_v22, %v450_v0 }
 0x142   : > { %v468_v26 = vmul.f32 %v1519_v23, %v461_v24 }
 0x144   : > { %1567 = vmatmul.mubr.msk.f32.vlgmr.msra.gmra.mrb[0].mxu0 %vm453_vm0, %v468_v26  ;;  %1578 = vmatmul.mubr.msk.f32.vlgmr.msra.gmra.mrb[0].mxu1 %vm453_vm0, %v468_v26 }
 0x145   : > { %1605 = vmatpush3.bf16.msra.mxu0 %v1604_v25  ;;  %1588 = vmatprep.mubr.msk.f32.mxu0 %vm1920_vm1, %v1921_v14 }
 0x146   : > { %1606 = vmatprep.subr.bf16.mxu0 %v1919_v6 }
 0x149   : > { %1608 = vmatpush3.bf16.msra.mxu0 %v1607_v29 }
 0x14c   : > { %1589 = vmatmul.mubr.msk.f32.vlgmr.msra.gmra.mrb[2].mxu0 %vm453_vm0, %v468_v26 }
 0x217   : > { %v549_v31 = vpop.f32.mrb[0].mxu0  ;;  %v785_v32 = vpop.f32.mrb[0].mxu1 }
 0x218   : > { %v550_v33 = vadd.f32 %v1520_v30, %v549_v31  ;;  %v1568_v34 = vpop.f32.mrb[1].mxu0  ;;  %v1579_v35 = vpop.f32.mrb[1].mxu1  ;;  %v2234_v39 = vadd.f32 %v1524_v36, %v785_v32 }
 0x21a   : > { %557 = vrot.lane.b32.xlu1 %v550_v33, %s1922_s8  ;;  %554 = vrot.lane.b32.xlu0 %v550_v33, %s1923_s16 }
 0x21e   : > { %560 = vrot.lane.b32.xlu1 %v550_v33, %s1924_s17 }
 0x21f   : > { %v1016_v38 = vpop.f32.mrb[2].mxu0 }
 0x220   : > { %v2236_v40 = vadd.f32 %v1528_v37, %v1016_v38  ;;  %v1590_v41 = vpop.f32.mrb[3].mxu0 }
 0x222   : > { %1027 = vrot.lane.b32.xlu0 %v2236_v40, %s1924_s17  ;;  %790 = vrot.lane.b32.xlu1 %v2234_v39, %s1923_s16 }
 0x226   : > { %793 = vrot.lane.b32.xlu1 %v2234_v39, %s1922_s8 }
 0x22a   : > { %796 = vrot.lane.b32.xlu1 %v2234_v39, %s1924_s17 }
 0x22e   : > { %1021 = vrot.lane.b32.xlu1 %v2236_v40, %s1923_s16 }
 0x232   : > { %1024 = vrot.lane.b32.xlu1 %v2236_v40, %s1922_s8  ;;  %s2436_s8 = sld [smem:[#allocation21_spill]] (%p2137_p7) }
 0x238   : > { %s1188_s16 = scalar_lea.vmem (%p2137_p7), %s2436_s8, %s1536_s23 }
 0x28c   : > { %v558_v49 = vpop.permute.xlu1 %557  ;;  %v555_v54 = vpop.permute.xlu0 %554 }
 0x28d   : > { %v563_v52 = vcombine.low %v550_v33, %v558_v49  ;;  %v564_v53 = vcombine.high %v550_v33, %v558_v49 }
 0x28f   : > { %v571_v59 = vrot.slane %v563_v52, %v2244_v51  ;;  %v578_v60 = vrot.slane %v564_v53, %v2244_v51 }
 0x290   : > { %v561_v55 = vpop.permute.xlu1 %560 }
 0x291   : > { %v579_v56 = vcombine.low %v555_v54, %v561_v55  ;;  %v580_v57 = vcombine.high %v555_v54, %v561_v55 }
 0x293   : > { %v587_v61 = vrot.slane %v579_v56, %v2244_v51  ;;  %v594_v62 = vrot.slane %v580_v57, %v2244_v51 }
 0x294   : > { %v791_v63 = vpop.permute.xlu1 %790 }
 0x295   : > { %v595_v0 = vcombine.low %v571_v59, %v587_v61  ;;  %v596_v1 = vcombine.high %v571_v59, %v587_v61  ;;  %v611_v2 = vcombine.low %v578_v60, %v594_v62  ;;  %v612_v3 = vcombine.high %v578_v60, %v594_v62 }
 0x297   : > { %v603_v4 = vrot.slane %v595_v0, %v2246_v58  ;;  %v610_v5 = vrot.slane %v596_v1, %v2246_v58  ;;  %v619_v6 = vrot.slane %v611_v2, %v2246_v58  ;;  %v626_v7 = vrot.slane %v612_v3, %v2246_v58 }
 0x298   : > { %v794_v8 = vpop.permute.xlu1 %793 }
 0x299   : > { %v631_v9 = vcombine.low %v603_v4, %v610_v5  ;;  %v1522_v10 = vcombine.high %v603_v4, %v610_v5  ;;  %v647_v11 = vcombine.low %v619_v6, %v626_v7  ;;  %v1523_v12 = vcombine.high %v619_v6, %v626_v7 }
 0x29a   : > { %v799_v17 = vcombine.low %v2234_v39, %v794_v8  ;;  %v800_v18 = vcombine.high %v2234_v39, %v794_v8  ;;  %v1028_v39 = vpop.permute.xlu0 %1027 }
 0x29b   : > { %v638_v13 = vrot.slane %v631_v9, %v2244_v51  ;;  %v646_v14 = vrot.slane %v1522_v10, %v2244_v51  ;;  %v654_v15 = vrot.slane %v647_v11, %v2244_v51  ;;  %v662_v16 = vrot.slane %v1523_v12, %v2244_v51 }
 0x29c   : > { %v797_v19 = vpop.permute.xlu1 %796  ;;  %v807_v30 = vrot.slane %v799_v17, %v2244_v51  ;;  %v814_v31 = vrot.slane %v800_v18, %v2244_v51 }
 0x29d   : > { %v663_v20 = vcombine.low %v638_v13, %v646_v14  ;;  %v664_v21 = vcombine.high %v638_v13, %v646_v14  ;;  %v679_v22 = vcombine.low %v654_v15, %v662_v16  ;;  %v680_v23 = vcombine.high %v654_v15, %v662_v16 }
 0x29e   : > { %v815_v24 = vcombine.low %v791_v63, %v797_v19  ;;  %v816_v25 = vcombine.high %v791_v63, %v797_v19 }
 0x29f   : > { %v671_v26 = vrot.slane %v663_v20, %v2246_v58  ;;  %v678_v27 = vrot.slane %v664_v21, %v2246_v58  ;;  %v687_v28 = vrot.slane %v679_v22, %v2246_v58  ;;  %v694_v29 = vrot.slane %v680_v23, %v2246_v58 }
 0x2a0   : > { %v823_v32 = vrot.slane %v815_v24, %v2244_v51  ;;  %v830_v33 = vrot.slane %v816_v25, %v2244_v51  ;;  %v1022_v34 = vpop.permute.xlu1 %1021 }
 0x2a1   : > { %v695_v35 = vcombine.low %v671_v26, %v687_v28  ;;  %v696_v36 = vcombine.high %v671_v26, %v687_v28  ;;  %v697_v37 = vcombine.low %v678_v27, %v694_v29  ;;  %v698_v38 = vcombine.high %v678_v27, %v694_v29 }
 0x2a2   : > { %v831_v41 = vcombine.low %v807_v30, %v823_v32  ;;  %v832_v42 = vcombine.high %v807_v30, %v823_v32  ;;  %v847_v43 = vcombine.low %v814_v31, %v830_v33  ;;  %v848_v44 = vcombine.high %v814_v31, %v830_v33 }
 0x2a3   : > { %v699_v45 = vmul.f32 0.35355338, %v695_v35  ;;  %v700_v46 = vmul.f32 0.35355338, %v696_v36  ;;  %v701_v47 = vmul.f32 0.35355338, %v697_v37  ;;  %v1046_v48 = vcombine.low %v1022_v34, %v1028_v39 }
 0x2a4   : > { %v702_v49 = vmul.f32 0.35355338, %v698_v38  ;;  %v839_v50 = vrot.slane %v831_v41, %v2246_v58  ;;  %v846_v52 = vrot.slane %v832_v42, %v2246_v58  ;;  %v855_v53 = vrot.slane %v847_v43, %v2246_v58  ;;  %v1025_v54 = vpop.permute.xlu1 %1024 }
 0x2a5   : > { %704 = vst.msk [vmem:[%s2277_s26] sm:$0xff] %vm703_vm2, %v699_v45  ;;  %705 = vst.msk [vmem:[%s2277_s26 + $0x8] sm:$0xff] %vm703_vm2, %v700_v46  ;;  %v862_v55 = vrot.slane %v848_v44, %v2246_v58  ;;  %v1047_v56 = vcombine.high %v1022_v34, %v1028_v39  ;;  %v1030_v57 = vcombine.low %v2236_v40, %v1025_v54 }
 0x2a6   : > { %706 = vst.msk [vmem:[%s2277_s26 + $0x10] sm:$0xff] %vm703_vm2, %v701_v47  ;;  %707 = vst.msk [vmem:[%s2277_s26 + $0x18] sm:$0xff] %vm703_vm2, %v702_v49  ;;  %v867_v59 = vcombine.low %v839_v50, %v846_v52  ;;  %v1526_v60 = vcombine.high %v839_v50, %v846_v52  ;;  %v1031_v61 = vcombine.high %v2236_v40, %v1025_v54 }
 0x2a7   : > { %v883_v62 = vcombine.low %v855_v53, %v862_v55  ;;  %v1527_v63 = vcombine.high %v855_v53, %v862_v55  ;;  %v1054_v0 = vrot.slane %v1046_v48, %v2244_v51  ;;  %v1038_v1 = vrot.slane %v1030_v57, %v2244_v51 }
 0x2a8   : > { %v874_v2 = vrot.slane %v867_v59, %v2244_v51  ;;  %v882_v3 = vrot.slane %v1526_v60, %v2244_v51  ;;  %v1061_v4 = vrot.slane %v1047_v56, %v2244_v51  ;;  %v1045_v5 = vrot.slane %v1031_v61, %v2244_v51 }
 0x2a9   : > { %v890_v6 = vrot.slane %v883_v62, %v2244_v51  ;;  %v898_v7 = vrot.slane %v1527_v63, %v2244_v51  ;;  %v1062_v8 = vcombine.low %v1038_v1, %v1054_v0  ;;  %v1063_v40 = vcombine.high %v1038_v1, %v1054_v0 }
 0x2aa   : > { %v899_v9 = vcombine.low %v874_v2, %v882_v3  ;;  %v900_v10 = vcombine.high %v874_v2, %v882_v3  ;;  %v1078_v11 = vcombine.low %v1045_v5, %v1061_v4  ;;  %v1079_v12 = vcombine.high %v1045_v5, %v1061_v4 }
 0x2ab   : > { %v915_v13 = vcombine.low %v890_v6, %v898_v7  ;;  %v916_v14 = vcombine.high %v890_v6, %v898_v7  ;;  %v1070_v15 = vrot.slane %v1062_v8, %v2246_v58  ;;  %v1077_v16 = vrot.slane %v1063_v40, %v2246_v58 }
 0x2ac   : > { %v907_v17 = vrot.slane %v899_v9, %v2246_v58  ;;  %v914_v18 = vrot.slane %v900_v10, %v2246_v58  ;;  %v1086_v19 = vrot.slane %v1078_v11, %v2246_v58  ;;  %v1093_v20 = vrot.slane %v1079_v12, %v2246_v58  ;;  %v1224_v47 = vld [vmem:[%s2277_s26 + $0x8] sm:$0xff] (%p2137_p7) }
 0x2ad   : > { %v923_v21 = vrot.slane %v915_v13, %v2246_v58  ;;  %v930_v22 = vrot.slane %v916_v14, %v2246_v58  ;;  %v1098_v23 = vcombine.low %v1070_v15, %v1077_v16  ;;  %v1530_v24 = vcombine.high %v1070_v15, %v1077_v16  ;;  %v1226_v48 = vld [vmem:[%s2277_s26 + $0x10] sm:$0xff] (%p2137_p7)  ;;  %v1228_v49 = vld [vmem:[%s2277_s26 + $0x18] sm:$0xff] (%p2137_p7)  ;;  %1225 = vst [vmem:[%s1188_s16 + $0x10] sm:$0xff] (%p2137_p7), %v1224_v47 }
 0x2ae   : > { %v1114_v25 = vcombine.low %v1086_v19, %v1093_v20  ;;  %v1531_v26 = vcombine.high %v1086_v19, %v1093_v20  ;;  %1227 = vst [vmem:[%s1188_s16 + $0x20] sm:$0xff] (%p2137_p7), %v1226_v48  ;;  %1229 = vst [vmem:[%s1188_s16 + $0x30] sm:$0xff] (%p2137_p7), %v1228_v49 }
 0x2af   : > { %v931_v27 = vcombine.low %v907_v17, %v923_v21  ;;  %v932_v28 = vcombine.high %v907_v17, %v923_v21  ;;  %v933_v29 = vcombine.low %v914_v18, %v930_v22  ;;  %v934_v30 = vcombine.high %v914_v18, %v930_v22 }
 0x2b0   : > { %v1105_v31 = vrot.slane %v1098_v23, %v2244_v51  ;;  %v1113_v32 = vrot.slane %v1530_v24, %v2244_v51  ;;  %v1121_v33 = vrot.slane %v1114_v25, %v2244_v51  ;;  %v1129_v34 = vrot.slane %v1531_v26, %v2244_v51 }
 0x2b1   : > { %935 = vst.msk [vmem:[%s2311_s29] sm:$0xff] %vm703_vm2, %v931_v27  ;;  %936 = vst.msk [vmem:[%s2311_s29 + $0x8] sm:$0xff] %vm703_vm2, %v932_v28 }
 0x2b2   : > { %937 = vst.msk [vmem:[%s2311_s29 + $0x10] sm:$0xff] %vm703_vm2, %v933_v29  ;;  %938 = vst.msk [vmem:[%s2311_s29 + $0x18] sm:$0xff] %vm703_vm2, %v934_v30  ;;  %v1130_v35 = vcombine.low %v1105_v31, %v1113_v32  ;;  %v1131_v36 = vcombine.high %v1105_v31, %v1113_v32  ;;  %v1146_v37 = vcombine.low %v1121_v33, %v1129_v34 }
 0x2b3   : > { %v1147_v38 = vcombine.high %v1121_v33, %v1129_v34  ;;  %1184 = sbr.rel (!%p2137_p7) target bundleno = 698 (0x2ba), region = 72 }
 0x2b4   : > { %v1138_v51 = vrot.slane %v1130_v35, %v2246_v58  ;;  %v1145_v39 = vrot.slane %v1131_v36, %v2246_v58  ;;  %v1154_v41 = vrot.slane %v1146_v37, %v2246_v58 }
 0x2b5   : > { %v1161_v42 = vrot.slane %v1147_v38, %v2246_v58  ;;  %v1222_v58 = vld [vmem:[%s2277_s26] sm:$0xff] (%p2137_p7) }
 0x2b6   : > { %v1162_v43 = vcombine.low %v1138_v51, %v1154_v41  ;;  %v1163_v44 = vcombine.high %v1138_v51, %v1154_v41  ;;  %1223 = vst [vmem:[%s1188_s16] sm:$0xff] (%p2137_p7), %v1222_v58 }
 0x2b7   : > { %v1164_v45 = vcombine.low %v1145_v39, %v1161_v42  ;;  %v1165_v46 = vcombine.high %v1145_v39, %v1161_v42 }
 0x2b8   : > { %1166 = vst.msk [vmem:[%s2326_s2] sm:$0xff] %vm703_vm2, %v1162_v43  ;;  %1167 = vst.msk [vmem:[%s2326_s2 + $0x8] sm:$0xff] %vm703_vm2, %v1163_v44 }
 0x2b9   : > { %1168 = vst.msk [vmem:[%s2326_s2 + $0x10] sm:$0xff] %vm703_vm2, %v1164_v45  ;;  %1169 = vst.msk [vmem:[%s2326_s2 + $0x18] sm:$0xff] %vm703_vm2, %v1165_v46 }
 0x2ba PF: > { %1235 = sbr.rel (!%p2137_p7) target bundleno = 710 (0x2c6), region = 110  ;;  %s2437_s10 = sld [smem:[#allocation16_spill]] (%p2137_p7)  ;;  %v1273_v50 = vld [vmem:[%s2311_s29] sm:$0xff] (%p2137_p7)  ;;  %v1275_v52 = vld [vmem:[%s2311_s29 + $0x8] sm:$0xff] (%p2137_p7)  ;;  %v1277_v53 = vld [vmem:[%s2311_s29 + $0x10] sm:$0xff] (%p2137_p7) }
 0x2bb   : > { %s2438_s11 = sld [smem:[#allocation15_spill]] (%p2137_p7)  ;;  %v1279_v54 = vld [vmem:[%s2311_s29 + $0x18] sm:$0xff] (%p2137_p7)  ;;  %s2439_s12 = sld [smem:[#allocation22_spill]] (%p2137_p7) }
 0x2c0   : > { %s1537_s13 = sshll.u32 (%p2137_p7), %s2437_s10, 3 }
 0x2c1   : > { %s1237_s28 = sadd.s32 %s2438_s11, %s1537_s13 }
 0x2c2   : > { %s1538_s17 = sshll.u32 %s1237_s28, 3 }
 0x2c3   : > { %s1239_s3 = scalar_lea.vmem %s2439_s12, %s1538_s17 }
 0x2c4   : > { %1274 = vst [vmem:[%s1239_s3] sm:$0xff] %v1273_v50  ;;  %1276 = vst [vmem:[%s1239_s3 + $0x10] sm:$0xff] %v1275_v52 }
 0x2c5   : > { %1278 = vst [vmem:[%s1239_s3 + $0x20] sm:$0xff] %v1277_v53  ;;  %1280 = vst [vmem:[%s1239_s3 + $0x30] sm:$0xff] %v1279_v54 }
 0x2c6 PF: > { %1286 = sbr.rel (!%p2137_p7) target bundleno = 722 (0x2d2), region = 148  ;;  %s2440_s4 = sld [smem:[#allocation16_spill]] (%p2137_p7)  ;;  %v1324_v55 = vld [vmem:[%s2326_s2] sm:$0xff] (%p2137_p7)  ;;  %v1326_v56 = vld [vmem:[%s2326_s2 + $0x8] sm:$0xff] (%p2137_p7)  ;;  %v1328_v57 = vld [vmem:[%s2326_s2 + $0x10] sm:$0xff] (%p2137_p7) }
 0x2c7   : > { %s2441_s22 = sld [smem:[#allocation15_spill]] (%p2137_p7)  ;;  %v1330_v59 = vld [vmem:[%s2326_s2 + $0x18] sm:$0xff] (%p2137_p7)  ;;  %s2442_s16 = sld [smem:[#allocation23_spill]] (%p2137_p7) }
 0x2cc   : > { %s1539_s29 = sshll.u32 (%p2137_p7), %s2440_s4, 3 }
 0x2cd   : > { %s1288_s23 = sadd.s32 %s2441_s22, %s1539_s29 }
 0x2ce   : > { %s1540_s24 = sshll.u32 %s1288_s23, 3 }
 0x2cf   : > { %s1290_s10 = scalar_lea.vmem %s2442_s16, %s1540_s24 }
 0x2d0   : > { %1325 = vst [vmem:[%s1290_s10] sm:$0xff] %v1324_v55  ;;  %1327 = vst [vmem:[%s1290_s10 + $0x10] sm:$0xff] %v1326_v56 }
 0x2d1   : > { %1329 = vst [vmem:[%s1290_s10 + $0x20] sm:$0xff] %v1328_v57  ;;  %1331 = vst [vmem:[%s1290_s10 + $0x30] sm:$0xff] %v1330_v59 }
 0x2d2 PF: > { %s26_s20 = sadd.s32 1, %s1911_s20   ;;  %s2443_s21 = sld [smem:[#allocation17_spill]] }
 0x2d3   : > { %p23_p7 = scmp.ge.s32.totalorder %s26_s20, 6   ;;  %s2444_s13 = smov %s1887_s14 }
 0x2d4   : > { %s2445_s14 = smov %s1891_s15  ;;  %s2446_s15 = smov %s2154_s25 }
 0x2d5   : > { %s2447_s16 = smov %s1903_s18  ;;  %s2448_s17 = smov %s1907_s19 }
 0x2d6   : > { %s2450_s19 = smov %s2456_s9  ;;  %25 = sbr.rel (!%p23_p7) target bundleno = 14 (0xe), region = 242 }
 0x2d8   : > { %s2449_s18 = smov %s2443_s21 }
 0x2dd   :  { %1361 = vsyncpa [#allocation3], 1 }
 0x2de   :  { %1363 = vsyncpa [#allocation3 + $0x1], 1 }
 0x2df   :  { %1364 = vsyncpa [#allocation5], 1 }
 0x2e0   :  { %1365 = vsyncpa [#allocation8], 1 }

</bundles_post_ra>
